<compile_context>
chip_gen: v5e
topology: v5e:2x2
jax: 0.10.0
libtpu: 0.0.40
codegen_flags: <defaults>
</compile_context>

<pallas_src>
import functools
import math

import jax
import jax.numpy as jnp
from jax import lax
from jax.experimental import pallas as pl
from jax.experimental.pallas import tpu as pltpu


def _mha_kernel(x_ref, wqkv_ref, wp_ref, bp_ref, o_ref, *,
                n_head, batch_block, seq_len, approx_recip):
    """Fused causal multi-head attention for one group of batch elements.

    x_ref    : (M, C)   with M = batch_block * seq_len  (lane-dense 2-D slab)
    wqkv_ref : (C, 3C)  [Wq * hd^-0.5 | Wk | Wv], pre-transposed to (in, out)
    wp_ref   : (C, C)   output projection, pre-transposed to (in, out)
    bp_ref   : (1, C)   output projection bias (f32)
    o_ref    : (M, C)   output slab
    """
    M, C = x_ref.shape
    T = seq_len
    bt = batch_block
    H = n_head
    hd = C // H
    dt = x_ref.dtype                      # matmul-operand dtype (bf16 or f32)

    x = x_ref[...]
    # Fused QKV projection: one (M, C) @ (C, 3C) MXU matmul, f32 accumulate.
    # Cast to the operand dtype immediately so the f32 (M, 3C) result is not
    # kept live (alongside a bf16 copy) across the whole head loop.
    qkv = jnp.dot(x, wqkv_ref[...],
                  preferred_element_type=jnp.float32).astype(dt)

    wp = wp_ref[...]                      # (C, C) resident projection weights

    # In-kernel causal mask: iota/compare is VPU filler that hides under the
    # MXU slot, and avoids a (T, T) f32 mask input (VMEM + HBM traffic).
    rows = lax.broadcasted_iota(jnp.int32, (T, T), 0)
    cols = lax.broadcasted_iota(jnp.int32, (T, T), 1)
    mask = jnp.where(rows >= cols, jnp.float32(0.0), jnp.float32(-1e30))

    acc = jnp.zeros((M, C), dtype=jnp.float32)

    # TODO(synk): per-head loop kept (a head-batched 'bqhd,bkhd->bhqk'
    # contraction needs a 2-batch-dim dot_general / sublane<->major transpose
    # that Mosaic does not reliably lower); the concat relayout is removed by
    # accumulating each head through its rows of Wproj, and every dot inside
    # is batched over the folded batch elements.
    # TODO(synk): for large T, add a KV grid axis ("arbitrary") with
    # flash-style running max/sum scratch and causal tile skipping; at
    # block_size=8 the full (bt, T, T) scores fit trivially in vregs.
    for h in range(H):
        q_h = qkv[:, h * hd:(h + 1) * hd].reshape(bt, T, hd)
        k_h = qkv[:, C + h * hd:C + (h + 1) * hd].reshape(bt, T, hd)
        v_h = qkv[:, 2 * C + h * hd:2 * C + (h + 1) * hd].reshape(bt, T, hd)

        # scores (the 1/sqrt(hd) scale is already folded into Wq)
        s = jnp.einsum('bqd,bkd->bqk', q_h, k_h,
                       preferred_element_type=jnp.float32)
        s = s + mask                                        # causal mask
        s = s - jnp.max(s, axis=-1, keepdims=True)          # f32 softmax math
        e = jnp.exp(s)
        denom = jnp.sum(e, axis=-1, keepdims=True)          # (bt, T, 1)
        # TODO(synk): attention dropout omitted (identity in eval mode)

        o_h = jnp.einsum('bqk,bkd->bqd', e.astype(dt), v_h,
                         preferred_element_type=jnp.float32)
        # deferred softmax normalization: reciprocal of (bt, T, 1) on the EUP
        o_h = o_h * pl.reciprocal(denom, approx=approx_recip)

        # Per-head output-projection accumulate (no (M, C) concatenate
        # relayout; v7x's MRB accumulates the MXU results in place).
        acc = acc + jnp.dot(o_h.reshape(M, hd).astype(dt),
                            wp[h * hd:(h + 1) * hd, :],
                            preferred_element_type=jnp.float32)

    y = acc + bp_ref[...]
    # TODO(synk): residual dropout omitted (identity in eval mode)
    # TODO(synk): for configs with C < 128 a lane-dense (.., 128) output
    # repack would avoid masked vst.msk partial stores; realistic configs
    # have C >= 128 so the store is already lane-dense there.
    o_ref[...] = y.astype(o_ref.dtype)


def _tpu_budget():
    """Return (vmem_limit_bytes to request, #TensorCores) with safe fallbacks.

    v5e/v6e (128 MiB physical, 1 TC) -> ~96 MiB limit, G=1 preferred.
    v7x     ( 64 MiB physical, 2 TC) -> ~48 MiB limit, split only when each
    half still fills the MXU M dimension.  Fallback is the conservative v7x
    budget so a mis-detected chip never over-requests scoped VMEM.
    """
    vmem_capacity = 64 * 1024 * 1024
    num_cores = 1
    try:
        info = pltpu.get_tpu_info()
        vmem_capacity = int(getattr(info, "vmem_capacity_bytes", vmem_capacity))
        for attr in ("num_cores", "tensorcores_per_chip", "num_tensorcores",
                     "cores_per_chip"):
            val = getattr(info, attr, None)
            if val:
                num_cores = int(val)
                break
    except Exception:
        pass
    vmem_limit = max(32 * 1024 * 1024, (3 * vmem_capacity) // 4)
    return vmem_limit, max(1, num_cores)


def _working_set_bytes(bt, T, C, itemsize, out_itemsize):
    """Rough per-grid-step VMEM estimate: double-buffered streaming slabs,
    (double-buffered) resident weights, and the main in-kernel intermediates."""
    M = bt * T
    streams = 2 * M * C * itemsize + 2 * M * C * out_itemsize   # x slab + out slab
    weights = 2 * (3 * C * C + C * C) * itemsize + 2 * 4 * C    # Wqkv + Wproj + bias
    interm = (M * 3 * C * itemsize      # qkv (operand dtype)
              + M * C * 4               # f32 accumulator
              + bt * T * T * 8          # scores + exp scores (f32)
              + M * C * 4)              # headroom for relayouts / y
    return streams + weights + interm


def _pick_batch_block(B, T, C, itemsize, out_itemsize, vmem_budget, num_cores,
                      rows_target=256):
    """Pick the batch fold bt (the grid has G = B // bt steps).

    Prefer the largest slab that fits the VMEM budget (fewest grid steps ->
    least per-step pipeline overhead, fullest MXU M dim).  Only split across
    TensorCores when every piece still has >= rows_target rows; never shrink
    the slab just to manufacture extra grid steps.
    """
    divisors = [d for d in range(1, B + 1) if B % d == 0]
    fitting = [d for d in divisors
               if _working_set_bytes(d, T, C, itemsize, out_itemsize) <= vmem_budget]
    if not fitting:
        fitting = [min(divisors)]
    bt = max(fitting)                    # default: one slab / fewest steps
    if num_cores >= 2:
        multi = [d for d in fitting
                 if (B // d) % num_cores == 0 and d * T >= rows_target]
        if multi:
            bt = max(multi)              # split only when both halves stay full
    return bt


def batch_mha(x, wq, wk, wv, wp, bp, *, n_head,
              compute_dtype=jnp.bfloat16, batch_block=None):
    """Causal batched multi-head attention matching the PyTorch module.

    x           : (B, T, C)
    wq/wk/wv/wp : (C, C) torch Linear layout (out_features, in_features)
    bp          : (C,)   proj bias
    """
    B, T, C = x.shape
    assert C % n_head == 0
    hd = C // n_head
    out_dtype = x.dtype

    # Wrapper-side weight prep (constant-folded by XLA):
    #   transpose to (in, out), fold the attention scale into Wq, fuse Q|K|V.
    wqkv = jnp.concatenate(
        [wq.T * (1.0 / math.sqrt(hd)), wk.T, wv.T], axis=1
    ).astype(compute_dtype)
    wp_t = wp.T.astype(compute_dtype)
    bp2 = bp.reshape(1, C).astype(jnp.float32)

    vmem_limit, num_cores = _tpu_budget()
    itemsize = jnp.dtype(compute_dtype).itemsize
    out_itemsize = jnp.dtype(out_dtype).itemsize
    bt = batch_block if batch_block is not None else _pick_batch_block(
        B, T, C, itemsize, out_itemsize,
        vmem_budget=int(0.8 * vmem_limit), num_cores=num_cores)
    assert B % bt == 0
    G = B // bt          # grid steps ("parallel" -> megacore sharding on v7x)
    M = bt * T           # rows per grid step

    x2 = x.astype(compute_dtype).reshape(B * T, C)   # lane-dense 2-D slab

    kernel = functools.partial(
        _mha_kernel, n_head=n_head, batch_block=bt, seq_len=T,
        approx_recip=(jnp.dtype(compute_dtype) != jnp.dtype(jnp.float32)))

    out2 = pl.pallas_call(
        kernel,
        out_shape=jax.ShapeDtypeStruct((B * T, C), out_dtype),
        grid_spec=pltpu.PrefetchScalarGridSpec(
            num_scalar_prefetch=0,
            grid=(G,),
            in_specs=[
                pl.BlockSpec((M, C), lambda g: (g, 0)),       # x slab (streamed)
                # TODO(synk): pipeline_mode=pl.Buffered(1) on these constant-
                # index inputs would halve their resident VMEM once single-
                # buffered pallas_call inputs are confirmed on all targets.
                pl.BlockSpec((C, 3 * C), lambda g: (0, 0)),   # fused Wqkv (resident)
                pl.BlockSpec((C, C), lambda g: (0, 0)),       # Wproj (resident)
                pl.BlockSpec((1, C), lambda g: (0, 0)),       # proj bias
            ],
            out_specs=pl.BlockSpec((M, C), lambda g: (g, 0)),
        ),
        compiler_params=pltpu.CompilerParams(
            dimension_semantics=("parallel",),
            vmem_limit_bytes=vmem_limit),
    )(x2, wqkv, wp_t, bp2)

    return out2.reshape(B, T, C)


def _reference(x, wq, wk, wv, wp, bp, n_head):
    """Pure-JAX reference mirroring the PyTorch forward."""
    B, T, C = x.shape
    hd = C // n_head
    q = x @ wq.T
    k = x @ wk.T
    v = x @ wv.T
    q = q.reshape(B, T, n_head, hd).transpose(0, 2, 1, 3)
    k = k.reshape(B, T, n_head, hd).transpose(0, 2, 1, 3)
    v = v.reshape(B, T, n_head, hd).transpose(0, 2, 1, 3)
    wei = (q @ k.transpose(0, 1, 3, 2)) * hd ** (-0.5)
    tril = jnp.tril(jnp.ones((T, T)))
    wei = jnp.where(tril == 0, -jnp.inf, wei)
    wei = jax.nn.softmax(wei, axis=-1)
    out = wei @ v
    out = out.transpose(0, 2, 1, 3).reshape(B, T, C)
    return out @ wp.T + bp


if __name__ == "__main__":
    # config: n_embed=32, n_head=4, block_size=8, dropout=0.0
    B, T, C, n_head = 2, 8, 32, 4

    key = jax.random.PRNGKey(0)
    kx, kq, kk, kv, kp, kb = jax.random.split(key, 6)
    scale = 1.0 / math.sqrt(C)
    x = jax.random.normal(kx, (B, T, C), jnp.float32)
    wq = jax.random.uniform(kq, (C, C), jnp.float32, -scale, scale)
    wk = jax.random.uniform(kk, (C, C), jnp.float32, -scale, scale)
    wv = jax.random.uniform(kv, (C, C), jnp.float32, -scale, scale)
    wp = jax.random.uniform(kp, (C, C), jnp.float32, -scale, scale)
    bp = jax.random.uniform(kb, (C,), jnp.float32, -scale, scale)

    ref = _reference(x, wq, wk, wv, wp, bp, n_head)

    # f32-operand path: tight-ish check against the pure-JAX reference
    # (tolerance accounts for scale-folding / deferred-normalization reorder).
    out_f32 = batch_mha(x, wq, wk, wv, wp, bp, n_head=n_head,
                        compute_dtype=jnp.float32)
    out_f32 = jax.block_until_ready(out_f32)
    assert out_f32.shape == (B, T, C)
    assert jnp.allclose(out_f32, ref, atol=5e-3, rtol=5e-3), "f32 mismatch vs reference"

    # default bf16-operand path (MXU-friendly): looser tolerance
    out_bf16 = batch_mha(x, wq, wk, wv, wp, bp, n_head=n_head)
    out_bf16 = jax.block_until_ready(out_bf16)
    assert out_bf16.shape == (B, T, C)
    assert jnp.allclose(out_bf16, ref, atol=5e-2, rtol=5e-2), "bf16 mismatch vs reference"

    print("KERNEL_OK")
</pallas_src>

<mosaic_0001>
module attributes {stable_mosaic.version = 11 : i64} {
  func.func @_mha_kernel(%arg0: i32, %arg1: memref<16x32xf32, #tpu.memory_space<vmem>>, %arg2: memref<32x96xf32, #tpu.memory_space<vmem>>, %arg3: memref<32x32xf32, #tpu.memory_space<vmem>>, %arg4: memref<1x32xf32, #tpu.memory_space<vmem>>, %arg5: memref<16x32xf32, #tpu.memory_space<vmem>>) attributes {dimension_semantics = [#tpu.dimension_semantics<parallel>], iteration_bounds = array<i64: 1>, scalar_prefetch = 0 : i64, scratch_operands = 0 : i64, tpu.core_type = #tpu.core_type<tc>, window_params = [{transform_indices = @transform_0, window_bounds = array<i64: 16, 32>}, {pipeline_mode = #tpu.pipeline_mode<synchronous>, transform_indices = @transform_1, window_bounds = array<i64: 32, 96>}, {pipeline_mode = #tpu.pipeline_mode<synchronous>, transform_indices = @transform_2, window_bounds = array<i64: 32, 32>}, {pipeline_mode = #tpu.pipeline_mode<synchronous>, transform_indices = @transform_3, window_bounds = array<i64: 1, 32>}, {transform_indices = @transform_4, window_bounds = array<i64: 16, 32>}]} {
    %c0 = arith.constant 0 : index
    %c0_0 = arith.constant 0 : index
    %0 = vector.load %arg1[%c0, %c0_0] : memref<16x32xf32, #tpu.memory_space<vmem>>, vector<16x32xf32>
    %c0_1 = arith.constant 0 : index
    %c0_2 = arith.constant 0 : index
    %1 = vector.load %arg2[%c0_1, %c0_2] : memref<32x96xf32, #tpu.memory_space<vmem>>, vector<32x96xf32>
    %cst = arith.constant dense<0.000000e+00> : vector<16x96xf32>
    %2 = tpu.matmul %0, %1, %cst {dimension_numbers = #tpu.dot_dimension_numbers<[1], [0], [0], [1], [0, 0, 1, 1], [], []>} : vector<16x32xf32>, vector<32x96xf32>, vector<16x96xf32> -> vector<16x96xf32>
    %c0_3 = arith.constant 0 : index
    %c0_4 = arith.constant 0 : index
    %3 = vector.load %arg3[%c0_3, %c0_4] : memref<32x32xf32, #tpu.memory_space<vmem>>, vector<32x32xf32>
    %4 = tpu.iota {dimensions = array<i32: 0>} : vector<8x8xi32>
    %5 = tpu.iota {dimensions = array<i32: 1>} : vector<8x8xi32>
    %6 = arith.cmpi sge, %4, %5 : vector<8x8xi32>
    %cst_5 = arith.constant 0.000000e+00 : f32
    %cst_6 = arith.constant -1.000000e+30 : f32
    %7 = vector.broadcast %cst_5 : f32 to vector<8x8xf32>
    %8 = vector.broadcast %cst_6 : f32 to vector<8x8xf32>
    %9 = arith.select %6, %7, %8 : vector<8x8xi1>, vector<8x8xf32>
    %cst_7 = arith.constant 0.000000e+00 : f32
    %10 = vector.broadcast %cst_7 : f32 to vector<16x32xf32>
    %11 = vector.extract_strided_slice %2 {offsets = [0, 0], sizes = [16, 8], strides = [1, 1]} : vector<16x96xf32> to vector<16x8xf32>
    %12 = vector.shape_cast %11 : vector<16x8xf32> to vector<2x8x8xf32>
    %13 = vector.extract_strided_slice %2 {offsets = [0, 32], sizes = [16, 8], strides = [1, 1]} : vector<16x96xf32> to vector<16x8xf32>
    %14 = vector.shape_cast %13 : vector<16x8xf32> to vector<2x8x8xf32>
    %15 = vector.extract_strided_slice %2 {offsets = [0, 64], sizes = [16, 8], strides = [1, 1]} : vector<16x96xf32> to vector<16x8xf32>
    %16 = vector.shape_cast %15 : vector<16x8xf32> to vector<2x8x8xf32>
    "tpu.trace_start"() <{level = 10 : i32, message = "bqd,bkd->bqk"}> : () -> ()
    %cst_8 = arith.constant dense<0.000000e+00> : vector<2x8x8xf32>
    %17 = tpu.matmul %12, %14, %cst_8 {dimension_numbers = #tpu.dot_dimension_numbers<[2], [2], [1], [1], [0, 0, 0, 1, 1, 1], [0], [0]>} : vector<2x8x8xf32>, vector<2x8x8xf32>, vector<2x8x8xf32> -> vector<2x8x8xf32>
    "tpu.trace_stop"() : () -> ()
    %18 = vector.shape_cast %9 : vector<8x8xf32> to vector<1x8x8xf32>
    %19 = vector.broadcast %18 : vector<1x8x8xf32> to vector<2x8x8xf32>
    %20 = arith.addf %17, %19 : vector<2x8x8xf32>
    %cst_9 = arith.constant dense<0xFF800000> : vector<2x8xf32>
    %21 = vector.multi_reduction <maximumf>, %20, %cst_9 [2] : vector<2x8x8xf32> to vector<2x8xf32>
    %22 = vector.shape_cast %21 : vector<2x8xf32> to vector<2x8x1xf32>
    %23 = vector.broadcast %22 : vector<2x8x1xf32> to vector<2x8x8xf32>
    %24 = arith.subf %20, %23 : vector<2x8x8xf32>
    %25 = math.exp %24 : vector<2x8x8xf32>
    %cst_10 = arith.constant dense<0.000000e+00> : vector<2x8xf32>
    %26 = vector.multi_reduction <add>, %25, %cst_10 [2] : vector<2x8x8xf32> to vector<2x8xf32>
    %27 = vector.shape_cast %26 : vector<2x8xf32> to vector<2x8x1xf32>
    "tpu.trace_start"() <{level = 10 : i32, message = "bqk,bkd->bqd"}> : () -> ()
    %cst_11 = arith.constant dense<0.000000e+00> : vector<2x8x8xf32>
    %28 = tpu.matmul %25, %16, %cst_11 {dimension_numbers = #tpu.dot_dimension_numbers<[2], [1], [1], [2], [0, 0, 0, 1, 1, 2], [0], [0]>} : vector<2x8x8xf32>, vector<2x8x8xf32>, vector<2x8x8xf32> -> vector<2x8x8xf32>
    "tpu.trace_stop"() : () -> ()
    %29 = tpu.reciprocal %27 : vector<2x8x1xf32> -> vector<2x8x1xf32>
    %30 = vector.broadcast %29 : vector<2x8x1xf32> to vector<2x8x8xf32>
    %31 = arith.mulf %28, %30 : vector<2x8x8xf32>
    %32 = vector.shape_cast %31 : vector<2x8x8xf32> to vector<16x8xf32>
    %33 = vector.extract_strided_slice %3 {offsets = [0, 0], sizes = [8, 32], strides = [1, 1]} : vector<32x32xf32> to vector<8x32xf32>
    %cst_12 = arith.constant dense<0.000000e+00> : vector<16x32xf32>
    %34 = tpu.matmul %32, %33, %cst_12 {dimension_numbers = #tpu.dot_dimension_numbers<[1], [0], [0], [1], [0, 0, 1, 1], [], []>} : vector<16x8xf32>, vector<8x32xf32>, vector<16x32xf32> -> vector<16x32xf32>
    %35 = arith.addf %10, %34 : vector<16x32xf32>
    %36 = vector.extract_strided_slice %2 {offsets = [0, 8], sizes = [16, 8], strides = [1, 1]} : vector<16x96xf32> to vector<16x8xf32>
    %37 = vector.shape_cast %36 : vector<16x8xf32> to vector<2x8x8xf32>
    %38 = vector.extract_strided_slice %2 {offsets = [0, 40], sizes = [16, 8], strides = [1, 1]} : vector<16x96xf32> to vector<16x8xf32>
    %39 = vector.shape_cast %38 : vector<16x8xf32> to vector<2x8x8xf32>
    %40 = vector.extract_strided_slice %2 {offsets = [0, 72], sizes = [16, 8], strides = [1, 1]} : vector<16x96xf32> to vector<16x8xf32>
    %41 = vector.shape_cast %40 : vector<16x8xf32> to vector<2x8x8xf32>
    "tpu.trace_start"() <{level = 10 : i32, message = "bqd,bkd->bqk"}> : () -> ()
    %cst_13 = arith.constant dense<0.000000e+00> : vector<2x8x8xf32>
    %42 = tpu.matmul %37, %39, %cst_13 {dimension_numbers = #tpu.dot_dimension_numbers<[2], [2], [1], [1], [0, 0, 0, 1, 1, 1], [0], [0]>} : vector<2x8x8xf32>, vector<2x8x8xf32>, vector<2x8x8xf32> -> vector<2x8x8xf32>
    "tpu.trace_stop"() : () -> ()
    %43 = vector.shape_cast %9 : vector<8x8xf32> to vector<1x8x8xf32>
    %44 = vector.broadcast %43 : vector<1x8x8xf32> to vector<2x8x8xf32>
    %45 = arith.addf %42, %44 : vector<2x8x8xf32>
    %cst_14 = arith.constant dense<0xFF800000> : vector<2x8xf32>
    %46 = vector.multi_reduction <maximumf>, %45, %cst_14 [2] : vector<2x8x8xf32> to vector<2x8xf32>
    %47 = vector.shape_cast %46 : vector<2x8xf32> to vector<2x8x1xf32>
    %48 = vector.broadcast %47 : vector<2x8x1xf32> to vector<2x8x8xf32>
    %49 = arith.subf %45, %48 : vector<2x8x8xf32>
    %50 = math.exp %49 : vector<2x8x8xf32>
    %cst_15 = arith.constant dense<0.000000e+00> : vector<2x8xf32>
    %51 = vector.multi_reduction <add>, %50, %cst_15 [2] : vector<2x8x8xf32> to vector<2x8xf32>
    %52 = vector.shape_cast %51 : vector<2x8xf32> to vector<2x8x1xf32>
    "tpu.trace_start"() <{level = 10 : i32, message = "bqk,bkd->bqd"}> : () -> ()
    %cst_16 = arith.constant dense<0.000000e+00> : vector<2x8x8xf32>
    %53 = tpu.matmul %50, %41, %cst_16 {dimension_numbers = #tpu.dot_dimension_numbers<[2], [1], [1], [2], [0, 0, 0, 1, 1, 2], [0], [0]>} : vector<2x8x8xf32>, vector<2x8x8xf32>, vector<2x8x8xf32> -> vector<2x8x8xf32>
    "tpu.trace_stop"() : () -> ()
    %54 = tpu.reciprocal %52 : vector<2x8x1xf32> -> vector<2x8x1xf32>
    %55 = vector.broadcast %54 : vector<2x8x1xf32> to vector<2x8x8xf32>
    %56 = arith.mulf %53, %55 : vector<2x8x8xf32>
    %57 = vector.shape_cast %56 : vector<2x8x8xf32> to vector<16x8xf32>
    %58 = vector.extract_strided_slice %3 {offsets = [8, 0], sizes = [8, 32], strides = [1, 1]} : vector<32x32xf32> to vector<8x32xf32>
    %cst_17 = arith.constant dense<0.000000e+00> : vector<16x32xf32>
    %59 = tpu.matmul %57, %58, %cst_17 {dimension_numbers = #tpu.dot_dimension_numbers<[1], [0], [0], [1], [0, 0, 1, 1], [], []>} : vector<16x8xf32>, vector<8x32xf32>, vector<16x32xf32> -> vector<16x32xf32>
    %60 = arith.addf %35, %59 : vector<16x32xf32>
    %61 = vector.extract_strided_slice %2 {offsets = [0, 16], sizes = [16, 8], strides = [1, 1]} : vector<16x96xf32> to vector<16x8xf32>
    %62 = vector.shape_cast %61 : vector<16x8xf32> to vector<2x8x8xf32>
    %63 = vector.extract_strided_slice %2 {offsets = [0, 48], sizes = [16, 8], strides = [1, 1]} : vector<16x96xf32> to vector<16x8xf32>
    %64 = vector.shape_cast %63 : vector<16x8xf32> to vector<2x8x8xf32>
    %65 = vector.extract_strided_slice %2 {offsets = [0, 80], sizes = [16, 8], strides = [1, 1]} : vector<16x96xf32> to vector<16x8xf32>
    %66 = vector.shape_cast %65 : vector<16x8xf32> to vector<2x8x8xf32>
    "tpu.trace_start"() <{level = 10 : i32, message = "bqd,bkd->bqk"}> : () -> ()
    %cst_18 = arith.constant dense<0.000000e+00> : vector<2x8x8xf32>
    %67 = tpu.matmul %62, %64, %cst_18 {dimension_numbers = #tpu.dot_dimension_numbers<[2], [2], [1], [1], [0, 0, 0, 1, 1, 1], [0], [0]>} : vector<2x8x8xf32>, vector<2x8x8xf32>, vector<2x8x8xf32> -> vector<2x8x8xf32>
    "tpu.trace_stop"() : () -> ()
    %68 = vector.shape_cast %9 : vector<8x8xf32> to vector<1x8x8xf32>
    %69 = vector.broadcast %68 : vector<1x8x8xf32> to vector<2x8x8xf32>
    %70 = arith.addf %67, %69 : vector<2x8x8xf32>
    %cst_19 = arith.constant dense<0xFF800000> : vector<2x8xf32>
    %71 = vector.multi_reduction <maximumf>, %70, %cst_19 [2] : vector<2x8x8xf32> to vector<2x8xf32>
    %72 = vector.shape_cast %71 : vector<2x8xf32> to vector<2x8x1xf32>
    %73 = vector.broadcast %72 : vector<2x8x1xf32> to vector<2x8x8xf32>
    %74 = arith.subf %70, %73 : vector<2x8x8xf32>
    %75 = math.exp %74 : vector<2x8x8xf32>
    %cst_20 = arith.constant dense<0.000000e+00> : vector<2x8xf32>
    %76 = vector.multi_reduction <add>, %75, %cst_20 [2] : vector<2x8x8xf32> to vector<2x8xf32>
    %77 = vector.shape_cast %76 : vector<2x8xf32> to vector<2x8x1xf32>
    "tpu.trace_start"() <{level = 10 : i32, message = "bqk,bkd->bqd"}> : () -> ()
    %cst_21 = arith.constant dense<0.000000e+00> : vector<2x8x8xf32>
    %78 = tpu.matmul %75, %66, %cst_21 {dimension_numbers = #tpu.dot_dimension_numbers<[2], [1], [1], [2], [0, 0, 0, 1, 1, 2], [0], [0]>} : vector<2x8x8xf32>, vector<2x8x8xf32>, vector<2x8x8xf32> -> vector<2x8x8xf32>
    "tpu.trace_stop"() : () -> ()
    %79 = tpu.reciprocal %77 : vector<2x8x1xf32> -> vector<2x8x1xf32>
    %80 = vector.broadcast %79 : vector<2x8x1xf32> to vector<2x8x8xf32>
    %81 = arith.mulf %78, %80 : vector<2x8x8xf32>
    %82 = vector.shape_cast %81 : vector<2x8x8xf32> to vector<16x8xf32>
    %83 = vector.extract_strided_slice %3 {offsets = [16, 0], sizes = [8, 32], strides = [1, 1]} : vector<32x32xf32> to vector<8x32xf32>
    %cst_22 = arith.constant dense<0.000000e+00> : vector<16x32xf32>
    %84 = tpu.matmul %82, %83, %cst_22 {dimension_numbers = #tpu.dot_dimension_numbers<[1], [0], [0], [1], [0, 0, 1, 1], [], []>} : vector<16x8xf32>, vector<8x32xf32>, vector<16x32xf32> -> vector<16x32xf32>
    %85 = arith.addf %60, %84 : vector<16x32xf32>
    %86 = vector.extract_strided_slice %2 {offsets = [0, 24], sizes = [16, 8], strides = [1, 1]} : vector<16x96xf32> to vector<16x8xf32>
    %87 = vector.shape_cast %86 : vector<16x8xf32> to vector<2x8x8xf32>
    %88 = vector.extract_strided_slice %2 {offsets = [0, 56], sizes = [16, 8], strides = [1, 1]} : vector<16x96xf32> to vector<16x8xf32>
    %89 = vector.shape_cast %88 : vector<16x8xf32> to vector<2x8x8xf32>
    %90 = vector.extract_strided_slice %2 {offsets = [0, 88], sizes = [16, 8], strides = [1, 1]} : vector<16x96xf32> to vector<16x8xf32>
    %91 = vector.shape_cast %90 : vector<16x8xf32> to vector<2x8x8xf32>
    "tpu.trace_start"() <{level = 10 : i32, message = "bqd,bkd->bqk"}> : () -> ()
    %cst_23 = arith.constant dense<0.000000e+00> : vector<2x8x8xf32>
    %92 = tpu.matmul %87, %89, %cst_23 {dimension_numbers = #tpu.dot_dimension_numbers<[2], [2], [1], [1], [0, 0, 0, 1, 1, 1], [0], [0]>} : vector<2x8x8xf32>, vector<2x8x8xf32>, vector<2x8x8xf32> -> vector<2x8x8xf32>
    "tpu.trace_stop"() : () -> ()
    %93 = vector.shape_cast %9 : vector<8x8xf32> to vector<1x8x8xf32>
    %94 = vector.broadcast %93 : vector<1x8x8xf32> to vector<2x8x8xf32>
    %95 = arith.addf %92, %94 : vector<2x8x8xf32>
    %cst_24 = arith.constant dense<0xFF800000> : vector<2x8xf32>
    %96 = vector.multi_reduction <maximumf>, %95, %cst_24 [2] : vector<2x8x8xf32> to vector<2x8xf32>
    %97 = vector.shape_cast %96 : vector<2x8xf32> to vector<2x8x1xf32>
    %98 = vector.broadcast %97 : vector<2x8x1xf32> to vector<2x8x8xf32>
    %99 = arith.subf %95, %98 : vector<2x8x8xf32>
    %100 = math.exp %99 : vector<2x8x8xf32>
    %cst_25 = arith.constant dense<0.000000e+00> : vector<2x8xf32>
    %101 = vector.multi_reduction <add>, %100, %cst_25 [2] : vector<2x8x8xf32> to vector<2x8xf32>
    %102 = vector.shape_cast %101 : vector<2x8xf32> to vector<2x8x1xf32>
    "tpu.trace_start"() <{level = 10 : i32, message = "bqk,bkd->bqd"}> : () -> ()
    %cst_26 = arith.constant dense<0.000000e+00> : vector<2x8x8xf32>
    %103 = tpu.matmul %100, %91, %cst_26 {dimension_numbers = #tpu.dot_dimension_numbers<[2], [1], [1], [2], [0, 0, 0, 1, 1, 2], [0], [0]>} : vector<2x8x8xf32>, vector<2x8x8xf32>, vector<2x8x8xf32> -> vector<2x8x8xf32>
    "tpu.trace_stop"() : () -> ()
    %104 = tpu.reciprocal %102 : vector<2x8x1xf32> -> vector<2x8x1xf32>
    %105 = vector.broadcast %104 : vector<2x8x1xf32> to vector<2x8x8xf32>
    %106 = arith.mulf %103, %105 : vector<2x8x8xf32>
    %107 = vector.shape_cast %106 : vector<2x8x8xf32> to vector<16x8xf32>
    %108 = vector.extract_strided_slice %3 {offsets = [24, 0], sizes = [8, 32], strides = [1, 1]} : vector<32x32xf32> to vector<8x32xf32>
    %cst_27 = arith.constant dense<0.000000e+00> : vector<16x32xf32>
    %109 = tpu.matmul %107, %108, %cst_27 {dimension_numbers = #tpu.dot_dimension_numbers<[1], [0], [0], [1], [0, 0, 1, 1], [], []>} : vector<16x8xf32>, vector<8x32xf32>, vector<16x32xf32> -> vector<16x32xf32>
    %110 = arith.addf %85, %109 : vector<16x32xf32>
    %c0_28 = arith.constant 0 : index
    %c0_29 = arith.constant 0 : index
    %111 = vector.load %arg4[%c0_28, %c0_29] : memref<1x32xf32, #tpu.memory_space<vmem>>, vector<1x32xf32>
    %112 = vector.broadcast %111 : vector<1x32xf32> to vector<16x32xf32>
    %113 = arith.addf %110, %112 : vector<16x32xf32>
    %c0_30 = arith.constant 0 : index
    %c0_31 = arith.constant 0 : index
    %114 = vector.load %arg5[%c0_30, %c0_31] : memref<16x32xf32, #tpu.memory_space<vmem>>, vector<16x32xf32>
    tpu.vector_store %arg5[%c0_30, %c0_31], %113 {strides = array<i32>} : memref<16x32xf32, #tpu.memory_space<vmem>>, vector<16x32xf32>,
    return
  }
  func.func @transform_0(%arg0: i32) -> (i32, i32) {
    %c0_i32 = arith.constant 0 : i32
    %c0_i32_0 = arith.constant 0 : i32
    return %arg0, %c0_i32 : i32, i32
  }
  func.func @transform_1(%arg0: i32) -> (i32, i32) {
    %c0_i32 = arith.constant 0 : i32
    %c0_i32_0 = arith.constant 0 : i32
    %c0_i32_1 = arith.constant 0 : i32
    return %c0_i32, %c0_i32_0 : i32, i32
  }
  func.func @transform_2(%arg0: i32) -> (i32, i32) {
    %c0_i32 = arith.constant 0 : i32
    %c0_i32_0 = arith.constant 0 : i32
    %c0_i32_1 = arith.constant 0 : i32
    return %c0_i32, %c0_i32_0 : i32, i32
  }
  func.func @transform_3(%arg0: i32) -> (i32, i32) {
    %c0_i32 = arith.constant 0 : i32
    %c0_i32_0 = arith.constant 0 : i32
    %c0_i32_1 = arith.constant 0 : i32
    return %c0_i32, %c0_i32_0 : i32, i32
  }
  func.func @transform_4(%arg0: i32) -> (i32, i32) {
    %c0_i32 = arith.constant 0 : i32
    %c0_i32_0 = arith.constant 0 : i32
    return %arg0, %c0_i32 : i32, i32
  }
}

</mosaic_0001>

<bundles_post_ra>
// kernel: tpu_custom_call.1
= control target key start
LH: loop header
LB: loop body
LE: loop exit
PB: predicated region body
PF: predicated region fallthrough
CT: control target
= control target key end

     0   :  { %9 = vsyncpa [#allocation3], 0  ;;  %s1267_s0 = inlined_call_operand.hbm [shape: f32[16,32], index: 0, kind: input, shape index: {}]   ;;  %s1268_s1 = inlined_call_operand.hbm [shape: f32[32,96], index: 1, kind: input, shape index: {}]   ;;  %s1269_s2 = inlined_call_operand.hbm [shape: f32[32,32], index: 2, kind: input, shape index: {}]   ;;  %s1270_s3 = inlined_call_operand.vmem [shape: f32[1,32], index: 3, kind: input, shape index: {}]   ;;  %s1271_s4 = inlined_call_operand.hbm [shape: f32[16,32], index: 4, kind: output, shape index: {}]  }
   0x1   :  { %10 = vsyncpa [#allocation6], 0 }
   0x2   :  { %11 = vsyncpa [#allocation4], 0  ;;  %s29_s17 = sshll.u32 %s1268_s1, 4  ;;  %s1069_s18 = smov [#allocation5]   ;;  %s30_s17 = int_to_ptr.hbm [resolvable:$true] %s29_s17 }
   0x3   :  { %s31_s19 = sshll.u32 %s1069_s18, 4  ;;  %s16_s22 = sshll.u32 %s1267_s0, 4  ;;  %s32_s19 = int_to_ptr.vmem [resolvable:$true] %s31_s19  ;;  %s17_s22 = int_to_ptr.hbm [resolvable:$true] %s16_s22 }
   0x4   :  { %s1070_s23 = smov 128   ;;  %s1071_s24 = smov 8  }
   0x5   :  { %37 = dma.hbm_to_vmem [thread:$0]  %s30_s17, 512, %s32_s19, [#allocation6], %s1070_s23, %s1070_s23, %s1071_s24  }
   0x6   :  { %s1072_s25 = smov [#allocation2]   ;;  %s42_s1 = sshll.u32 %s1269_s2, 4  ;;  %s43_s1 = int_to_ptr.hbm [resolvable:$true] %s42_s1 }
   0x7   :  { %s18_s26 = sshll.u32 %s1072_s25, 4  ;;  %s1073_s0 = smov [#allocation7]   ;;  %s19_s26 = int_to_ptr.vmem [resolvable:$true] %s18_s26 }
   0x8   :  { %24 = dma.hbm_to_vmem [thread:$0]  %s17_s22, 256, %s19_s26, [#allocation3], %s1070_s23, %s1070_s23, %s1071_s24  }
   0x9   :  { %s44_s29 = sshll.u32 %s1073_s0, 4  ;;  %s45_s29 = int_to_ptr.vmem [resolvable:$true] %s44_s29 }
   0xa   :  { %50 = dma.hbm_to_vmem [thread:$0]  %s43_s1, 512, %s45_s29, [#allocation6], %s1070_s23, %s1070_s23, %s1071_s24  }
   0xb   :  { %1063 = dma.done.wait [#allocation3], 256  }
   0xc   :  { %1064 = vsyncadd [#allocation3], 4294967040 }
   0xd   :  { %1065 = dma.done.wait [#allocation6], 1024  }
   0xe   :  { %1066 = vsyncadd [#allocation6], 4294966272  ;;  %v70_v0 = vld [vmem:[#allocation5 + $0x18] sm:$0xff]  ;;  %v69_v1 = vld [vmem:[#allocation5 + $0x10] sm:$0xff]  ;;  %vm71_vm0 = vcmask 261120   ;;  %s1074_s2 = smov 88   ;;  %v105_v12 = vlaneseq }
   0xf   :  { %90 = vmatpush.msra.mxu0 %v70_v0  ;;  %v68_v2 = vld [vmem:[#allocation5 + $0x8] sm:$0xff]  ;;  %v67_v3 = vld [vmem:[#allocation5] sm:$0xff]  ;;  %v65_v4 = vld [vmem:[#allocation2] sm:$0xff]  ;;  %s1075_s30 = smov 96   ;;  %s1076_s5 = smov 120   ;;  %vm114_vm1 = vcmask 64512  }
  0x10   :  { %v66_v5 = vld [vmem:[#allocation2 + $0x8] sm:$0xff]  ;;  %s1077_s6 = smov 64   ;;  %v106_v13 = vshrl.u32 %v105_v12, 7  ;;  %v108_v14 = vand.u32 127, %v105_v12  ;;  %v1078_v15 = vmov -1e+30  }
  0x11   :  { %91 = vmatpush.msra.mxu0 %v69_v1  ;;  %s1079_s7 = smov 56   ;;  %s1080_s8 = smov 80   ;;  %v101_v39 = vld [vmem:[#allocation7] sm:$0xff] }
  0x12   :  { %vm109_vm2 = vcmp.ge.s32.totalorder %v106_v13, %v108_v14  ;;  %s1081_s9 = smov 112   ;;  %s1082_s10 = smov 48  }
  0x13   :  { %92 = vmatpush.msra.mxu0 %v68_v2  ;;  %v1151_v16 = vsel %vm109_vm2, 0.0, %v1078_v15  ;;  %s1083_s11 = smov 72   ;;  %s1084_s12 = smov 104  }
  0x14   :  { %s1085_s13 = smov 40   ;;  %s1086_s16 = smov [#allocation8]  }
  0x15   :  { %93 = vmatpush.msra.mxu0 %v67_v3  ;;  %s866_s17 = sshll.u32 %s1086_s16, 4  ;;  %s868_s20 = sshll.u32 %s1271_s4, 4  ;;  %s867_s17 = int_to_ptr.vmem [resolvable:$true] %s866_s17  ;;  %s869_s20 = int_to_ptr.hbm [resolvable:$true] %s868_s20 }
  0x16   :  { %882 = vmatmul.msk.f32.vlgmr.msra.gmra.mxu0 %vm71_vm0, %v65_v4 }
  0x17   :  { %472 = vmatpush.msrb.mxu0 %v101_v39 }
  0x1e   :  { %883 = vmatmul.msk.f32.gmra.mxu0 %vm71_vm0, %v66_v5 }
  0x93   :  { %v1132_v6 = vpop.f32.mrf.mxu0 }
  0x94   :  { %268 = vrot.lane.b32.xlu2 %v1132_v6, %s1074_s2  ;;  %112 = vrot.lane.b32.xlu0 %v1132_v6, %s1075_s30 }
  0x9b   :  { %v1136_v7 = vpop.f32.mrf.mxu0 }
  0x9c   :  { %266 = vrot.lane.b32.xlu2 %v1132_v6, %s1076_s5  ;;  %140 = vrot.lane.b32.xlu1 %v1136_v7, %s1075_s30 }
  0xa4   :  { %184 = vrot.lane.b32.xlu1 %v1132_v6, %s1077_s6  ;;  %296 = vrot.lane.b32.xlu2 %v1136_v7, %s1074_s2 }
  0xee   :  { %v269_v11 = vpop.permute.xlu2 %268 }
  0xf6   :  { %v267_v19 = vpop.permute.xlu2 %266 }
  0xfe   :  { %v297_v21 = vpop.permute.xlu2 %296 }
 0x106   :  { %v113_v8 = vpop.permute.xlu0 %112 }
 0x107   :  { %884 = vmatpush.xpose.msk.msra.mxu1 %vm114_vm1, %v113_v8 }
 0x10a   :  { %885 = vmatmul.msk.f32.vlgmr.msra.gmra.mxu1 %vm114_vm1, %v1132_v6 }
 0x10e   :  { %v141_v9 = vpop.permute.xlu1 %140 }
 0x10f   :  { %886 = vmatpush.xpose.msk.msra.mxu2 %vm114_vm1, %v141_v9 }
 0x112   :  { %887 = vmatmul.msk.f32.vlgmr.msra.gmra.mxu2 %vm114_vm1, %v1136_v7 }
 0x113   :  { %892 = vmatpush.xpose.msk.msrb.mxu2 %vm114_vm1, %v297_v21 }
 0x116   :  { %v185_v10 = vpop.permute.xlu1 %184 }
 0x117   :  { %205 = vmatpush.msrb.mxu1 %v185_v10 }
 0x119   :  { %890 = vmatpush.xpose.msk.msra.mxu1 %vm114_vm1, %v269_v11 }
 0x187   :  { %v136_v17 = vpop.f32.mrf.mxu1 }
 0x188   :  { %v137_v18 = vadd.f32 %v136_v17, %v1151_v16 }
 0x18a   :  { %v166_v20 = vsel %vm114_vm1, %v137_v18, -inf }
 0x18b   :  { %167 = vmax.xlane.f32.xlu0 %v166_v20 }
 0x195   :  { %v163_v22 = vpop.f32.mrf.mxu2 }
 0x196   :  { %v164_v23 = vadd.f32 %v163_v22, %v1151_v16 }
 0x198   :  { %v169_v24 = vsel %vm114_vm1, %v164_v23, -inf }
 0x199   :  { %170 = vmax.xlane.f32.xlu1 %v169_v24 }
 0x19f   :  { %210 = vrot.lane.b32.xlu0 %v1136_v7, %s1077_s6 }
 0x1a7   :  { %340 = vrot.lane.b32.xlu0 %v1132_v6, %s1079_s7 }
 0x1af   :  { %482 = vrot.lane.b32.xlu0 %v1132_v6, %s1080_s8 }
 0x1b2   :  { %294 = vrot.lane.b32.xlu1 %v1136_v7, %s1076_s5 }
 0x1fe   :  { %v168_v25 = vpop.xlane.xlu0 %167 }
 0x1ff   :  { %v172_v26 = vsub.f32 %v137_v18, %v168_v25 }
 0x201   :  { %v174_v27 = vmul.f32 1.442695, %v172_v26 }
 0x203   :  { %935 = vpow2.f32 %v174_v27 }
 0x209   :  { %v936_v28 = vpop.eup %935 }
 0x20a   :  { %888 = vmatmul.msk.f32.vlgmr.msrb.gmra.mxu1 %vm114_vm1, %v936_v28  ;;  %v178_v29 = vsel %vm114_vm1, %v936_v28, 0.0 }
 0x20b   :  { %179 = vadd.xlane.f32.xlu1 %v178_v29 }
 0x20c   :  { %v171_v30 = vpop.xlane.xlu1 %170 }
 0x20d   :  { %v173_v31 = vsub.f32 %v164_v23, %v171_v30 }
 0x20f   :  { %v176_v32 = vmul.f32 1.442695, %v173_v31 }
 0x211   :  { %937 = vpow2.f32 %v176_v32  ;;  %v211_v33 = vpop.permute.xlu0 %210 }
 0x212   :  { %231 = vmatpush.msra.mxu3 %v211_v33  ;;  %891 = vmatmul.msk.f32.vlgmr.msra.gmra.mxu1 %vm114_vm1, %v267_v19 }
 0x217   :  { %v938_v34 = vpop.eup %937 }
 0x218   :  { %v181_v35 = vsel %vm114_vm1, %v938_v34, 0.0  ;;  %889 = vmatmul.msk.f32.vlgmr.msra.gmra.mxu3 %vm114_vm1, %v938_v34 }
 0x219   :  { %v341_v36 = vpop.permute.xlu0 %340  ;;  %182 = vadd.xlane.f32.xlu0 %v181_v35 }
 0x21a   :  { %361 = vmatpush.msrb.mxu3 %v341_v36 }
 0x221   :  { %v483_v37 = vpop.permute.xlu0 %482 }
 0x222   :  { %900 = vmatpush.xpose.msk.msra.mxu3 %vm114_vm1, %v483_v37 }
 0x224   :  { %508 = vrot.lane.b32.xlu1 %v1136_v7, %s1081_s9  ;;  %v295_v38 = vpop.permute.xlu1 %294 }
 0x225   :  { %893 = vmatmul.msk.f32.vlgmr.msrb.gmra.mxu2 %vm114_vm1, %v295_v38 }
 0x22d   :  { %366 = vrot.lane.b32.xlu0 %v1136_v7, %s1079_s7 }
 0x235   :  { %554 = vrot.lane.b32.xlu0 %v1132_v6, %s1082_s10 }
 0x23d   :  { %697 = vrot.lane.b32.xlu0 %v1136_v7, %s1083_s11 }
 0x27e   :  { %v180_v40 = vpop.xlane.xlu1 %179 }
 0x27f   :  { %939 = vrcp.f32 %v180_v40  ;;  %v247_v45 = vand.u32 2147483648, %v180_v40  ;;  %v245_v47 = vand.u32 2147483647, %v180_v40  ;;  %vm241_vm4 = vweird.f32 %v180_v40 }
 0x281   :  { %v248_v50 = vor.u32 1.1754944e-38, %v247_v45  ;;  %vm246_vm6 = vcmp.eq.f32.partialorder %v245_v47, 8.507059e+37 }
 0x285   :  { %v940_v41 = vpop.eup %939 }
 0x286   :  { %v237_v42 = vmul.f32 %v940_v41, %v180_v40  ;;  %vm242_vm3 = vweird.f32 %v940_v41 }
 0x287   :  { %v207_v43 = vpop.f32.mrf.mxu1  ;;  %vm243_vm5 = vmor %vm241_vm4, %vm242_vm3 }
 0x288   :  { %v238_v44 = vsub.f32 1.0, %v237_v42 }
 0x28a   :  { %v239_v46 = vmul.f32 %v940_v41, %v238_v44 }
 0x28c   :  { %v240_v48 = vadd.f32 %v940_v41, %v239_v46  ;;  %v183_v49 = vpop.xlane.xlu0 %182 }
 0x28d   :  { %941 = vrcp.f32 %v183_v49  ;;  %v261_v60 = vand.u32 2147483648, %v183_v49  ;;  %vm255_vm7 = vweird.f32 %v183_v49  ;;  %v259_v62 = vand.u32 2147483647, %v183_v49 }
 0x28e   :  { %v244_v51 = vsel %vm243_vm5, %v940_v41, %v240_v48 }
 0x28f   :  { %v249_v52 = vsel %vm246_vm6, %v248_v50, %v244_v51  ;;  %v291_v53 = vpop.f32.mrf.mxu1  ;;  %v262_v1 = vor.u32 1.1754944e-38, %v261_v60  ;;  %vm260_vm10 = vcmp.eq.f32.partialorder %v259_v62, 8.507059e+37 }
 0x290   :  { %v264_v54 = vmul.f32 %v249_v52, %v207_v43  ;;  %v292_v55 = vadd.f32 %v291_v53, %v1151_v16 }
 0x292   :  { %898 = vmatmul.msk.f32.vlgmr.msrb.gmra.mxu0 %vm114_vm1, %v264_v54  ;;  %v322_v56 = vsel %vm114_vm1, %v292_v55, -inf }
 0x293   :  { %v942_v57 = vpop.eup %941  ;;  %323 = vmax.xlane.f32.xlu2 %v322_v56 }
 0x294   :  { %v251_v58 = vmul.f32 %v942_v57, %v183_v49  ;;  %vm256_vm8 = vweird.f32 %v942_v57 }
 0x295   :  { %vm257_vm9 = vmor %vm255_vm7, %vm256_vm8 }
 0x296   :  { %v252_v59 = vsub.f32 1.0, %v251_v58  ;;  %v509_v25 = vpop.permute.xlu1 %508 }
 0x298   :  { %v253_v61 = vmul.f32 %v942_v57, %v252_v59 }
 0x29a   :  { %v254_v63 = vadd.f32 %v942_v57, %v253_v61 }
 0x29b   :  { %v233_v0 = vpop.f32.mrf.mxu3 }
 0x29c   :  { %v258_v2 = vsel %vm257_vm9, %v942_v57, %v254_v63 }
 0x29d   :  { %v263_v3 = vsel %vm260_vm10, %v262_v1, %v258_v2  ;;  %v103_v1 = vld [vmem:[#allocation7 + $0x10] sm:$0xff] }
 0x29e   :  { %v265_v4 = vmul.f32 %v263_v3, %v233_v0 }
 0x29f   :  { %v367_v5 = vpop.permute.xlu0 %366 }
 0x2a0   :  { %387 = vmatpush.msrb.mxu1 %v367_v5  ;;  %899 = vmatmul.msk.f32.gmra.mxu0 %vm114_vm1, %v265_v4 }
 0x2a7   :  { %v555_v14 = vpop.permute.xlu0 %554 }
 0x2a8   :  { %v319_v8 = vpop.f32.mrf.mxu2 }
 0x2a9   :  { %v320_v9 = vadd.f32 %v319_v8, %v1151_v16 }
 0x2ab   :  { %480 = vrot.lane.b32.xlu2 %v1132_v6, %s1081_s9  ;;  %v325_v10 = vsel %vm114_vm1, %v320_v9, -inf }
 0x2af   :  { %v698_v18 = vpop.permute.xlu0 %697 }
 0x2d4   :  { %326 = vmax.xlane.f32.xlu2 %v325_v10 }
 0x2ec   :  { %510 = vrot.lane.b32.xlu2 %v1136_v7, %s1080_s8 }
 0x2f4   :  { %669 = vrot.lane.b32.xlu2 %v1132_v6, %s1083_s11 }
 0x2fc   :  { %695 = vrot.lane.b32.xlu2 %v1136_v7, %s1084_s12 }
 0x304   :  { %580 = vrot.lane.b32.xlu2 %v1136_v7, %s1082_s10 }
 0x306   :  { %v324_v11 = vpop.xlane.xlu2 %323 }
 0x307   :  { %v328_v12 = vsub.f32 %v292_v55, %v324_v11 }
 0x309   :  { %v330_v13 = vmul.f32 1.442695, %v328_v12 }
 0x30b   :  { %943 = vpow2.f32 %v330_v13 }
 0x30e   :  { %v481_v17 = vpop.permute.xlu2 %480 }
 0x30f   :  { %v1224_v46 = vpop.f32.mrf.mxu0 }
 0x311   :  { %v1197_v15 = vpop.eup %943 }
 0x312   :  { %894 = vmatmul.msk.f32.vlgmr.msrb.gmra.mxu3 %vm114_vm1, %v1197_v15  ;;  %v334_v55 = vsel %vm114_vm1, %v1197_v15, 0.0 }
 0x313   :  { %575 = vmatpush.msrb.mxu3 %v555_v14 }
 0x31a   :  { %901 = vmatmul.msk.f32.vlgmr.msra.gmra.mxu3 %vm114_vm1, %v481_v17 }
 0x31b   :  { %910 = vmatpush.xpose.msk.msra.mxu3 %vm114_vm1, %v698_v18 }
 0x31d   :  { %v1226_v47 = vpop.f32.mrf.mxu0 }
 0x347   :  { %v327_v19 = vpop.xlane.xlu2 %326 }
 0x348   :  { %v329_v20 = vsub.f32 %v320_v9, %v327_v19 }
 0x34a   :  { %v332_v21 = vmul.f32 1.442695, %v329_v20 }
 0x34c   :  { %945 = vpow2.f32 %v332_v21 }
 0x34f   :  { %v511_v22 = vpop.permute.xlu2 %510 }
 0x350   :  { %902 = vmatpush.xpose.msk.msra.mxu1 %vm114_vm1, %v511_v22 }
 0x352   :  { %v946_v23 = vpop.eup %945 }
 0x353   :  { %895 = vmatmul.msk.f32.vlgmr.msrb.gmra.mxu1 %vm114_vm1, %v946_v23  ;;  %v337_v39 = vsel %vm114_vm1, %v946_v23, 0.0 }
 0x357   :  { %v670_v24 = vpop.permute.xlu2 %669 }
 0x358   :  { %908 = vmatpush.xpose.msk.msra.mxu0 %vm114_vm1, %v670_v24 }
 0x35b   :  { %903 = vmatmul.msk.f32.vlgmr.msra.gmra.mxu1 %vm114_vm1, %v509_v25 }
 0x35f   :  { %v696_v26 = vpop.permute.xlu2 %695 }
 0x367   :  { %v581_v27 = vpop.permute.xlu2 %580 }
 0x368   :  { %601 = vmatpush.msrb.mxu1 %v581_v27 }
 0x395   :  { %v1207_v28 = vpop.f32.mrf.mxu3 }
 0x39d   :  { %v505_v29 = vpop.f32.mrf.mxu3 }
 0x39e   :  { %v506_v30 = vadd.f32 %v505_v29, %v1151_v16 }
 0x3a0   :  { %v536_v31 = vsel %vm114_vm1, %v506_v30, -inf }
 0x3a1   :  { %537 = vmax.xlane.f32.xlu1 %v536_v31 }
 0x3ba   :  { %667 = vrot.lane.b32.xlu1 %v1132_v6, %s1084_s12 }
 0x3d0   :  { %v1213_v32 = vpop.f32.mrf.mxu1 }
 0x3d8   :  { %v533_v33 = vpop.f32.mrf.mxu1 }
 0x3d9   :  { %v534_v34 = vadd.f32 %v533_v33, %v1151_v16 }
 0x3db   :  { %v539_v35 = vsel %vm114_vm1, %v534_v34, -inf }
 0x3dc   :  { %540 = vmax.xlane.f32.xlu0 %v539_v35 }
 0x3f0   :  { %741 = vrot.lane.b32.xlu0 %v1132_v6, %s1085_s13 }
 0x414   :  { %v538_v36 = vpop.xlane.xlu1 %537 }
 0x415   :  { %v542_v37 = vsub.f32 %v506_v30, %v538_v36 }
 0x417   :  { %v544_v38 = vmul.f32 1.442695, %v542_v37 }
 0x419   :  { %947 = vpow2.f32 %v544_v38 }
 0x41a   :  { %338 = vadd.xlane.f32.xlu0 %v337_v39 }
 0x41f   :  { %v948_v40 = vpop.eup %947 }
 0x420   :  { %904 = vmatmul.msk.f32.vlgmr.msrb.gmra.mxu3 %vm114_vm1, %v948_v40  ;;  %v548_v56 = vsel %vm114_vm1, %v948_v40, 0.0 }
 0x428   :  { %911 = vmatmul.msk.f32.vlgmr.msra.gmra.mxu3 %vm114_vm1, %v696_v26 }
 0x42c   :  { %v668_v41 = vpop.permute.xlu1 %667 }
 0x42d   :  { %909 = vmatmul.msk.f32.vlgmr.msra.gmra.mxu0 %vm114_vm1, %v668_v41 }
 0x44f   :  { %v541_v42 = vpop.xlane.xlu0 %540 }
 0x450   :  { %v543_v43 = vsub.f32 %v534_v34, %v541_v42 }
 0x452   :  { %v546_v44 = vmul.f32 1.442695, %v543_v43 }
 0x454   :  { %949 = vpow2.f32 %v546_v44 }
 0x45a   :  { %v950_v6 = vpop.eup %949 }
 0x45b   :  { %905 = vmatmul.msk.f32.vlgmr.msrb.gmra.mxu1 %vm114_vm1, %v950_v6  ;;  %v551_v57 = vsel %vm114_vm1, %v950_v6, 0.0 }
 0x462   :  { %v742_v45 = vpop.permute.xlu0 %741 }
 0x463   :  { %762 = vmatpush.msra.mxu1 %v742_v45 }
 0x48d   :  { %v339_v59 = vpop.xlane.xlu0 %338 }
 0x48e   :  { %951 = vrcp.f32 %v339_v59  ;;  %v417_v29 = vand.u32 2147483648, %v339_v59  ;;  %vm411_vm2 = vweird.f32 %v339_v59  ;;  %v415_v31 = vand.u32 2147483647, %v339_v59 }
 0x490   :  { %v418_v37 = vor.u32 1.1754944e-38, %v417_v29  ;;  %vm416_vm4 = vcmp.eq.f32.partialorder %v415_v31, 8.507059e+37 }
 0x494   :  { %v952_v3 = vpop.eup %951 }
 0x495   :  { %v407_v8 = vmul.f32 %v952_v3, %v339_v59  ;;  %vm412_vm13 = vweird.f32 %v952_v3 }
 0x496   :  { %vm413_vm3 = vmor %vm411_vm2, %vm412_vm13 }
 0x497   :  { %v408_v11 = vsub.f32 1.0, %v407_v8 }
 0x499   :  { %v409_v17 = vmul.f32 %v952_v3, %v408_v11 }
 0x49b   :  { %v410_v24 = vadd.f32 %v952_v3, %v409_v17 }
 0x49d   :  { %v414_v36 = vsel %vm413_vm3, %v952_v3, %v410_v24 }
 0x49e   :  { %v419_v39 = vsel %vm416_vm4, %v418_v37, %v414_v36 }
 0x49f   :  { %v421_v6 = vmul.f32 %v419_v39, %v1213_v32 }
 0x4a3   :  { %v1228_v48 = vpop.f32.mrf.mxu3 }
 0x4aa   :  { %v692_v49 = vpop.f32.mrf.mxu0 }
 0x4ab   :  { %v693_v50 = vadd.f32 %v692_v49, %v1151_v16  ;;  %v720_v51 = vpop.f32.mrf.mxu3 }
 0x4ac   :  { %v721_v52 = vadd.f32 %v720_v51, %v1151_v16  ;;  %v102_v16 = vld [vmem:[#allocation7 + $0x8] sm:$0xff] }
 0x4ad   :  { %v723_v53 = vsel %vm114_vm1, %v693_v50, -inf  ;;  %443 = vmatpush.msra.mxu2 %v102_v16 }
 0x4ae   :  { %724 = vmax.xlane.f32.xlu1 %v723_v53  ;;  %v726_v54 = vsel %vm114_vm1, %v721_v52, -inf }
 0x4af   :  { %727 = vmax.xlane.f32.xlu2 %v726_v54  ;;  %657 = vmatpush.msrb.mxu2 %v103_v1 }
 0x4b7   :  { %335 = vadd.xlane.f32.xlu2 %v334_v55 }
 0x4bf   :  { %549 = vadd.xlane.f32.xlu2 %v548_v56 }
 0x4c7   :  { %552 = vadd.xlane.f32.xlu2 %v551_v57  ;;  %767 = vrot.lane.b32.xlu1 %v1136_v7, %s1085_s13 }
 0x4d8   :  { %v603_v57 = vpop.f32.mrf.mxu1 }
 0x521   :  { %v725_v58 = vpop.xlane.xlu1 %724 }
 0x522   :  { %v729_v60 = vsub.f32 %v693_v50, %v725_v58  ;;  %v728_v61 = vpop.xlane.xlu2 %727  ;;  %v104_v58 = vld [vmem:[#allocation7 + $0x18] sm:$0xff] }
 0x523   :  { %v730_v62 = vsub.f32 %v721_v52, %v728_v61  ;;  %844 = vmatpush.msrb.mxu3 %v104_v58 }
 0x524   :  { %v731_v63 = vmul.f32 1.442695, %v729_v60 }
 0x525   :  { %v733_v0 = vmul.f32 1.442695, %v730_v62 }
 0x526   :  { %953 = vpow2.f32 %v731_v63 }
 0x527   :  { %955 = vpow2.f32 %v733_v0 }
 0x52a   :  { %v336_v2 = vpop.xlane.xlu2 %335 }
 0x52b   :  { %957 = vrcp.f32 %v336_v2  ;;  %v403_v15 = vand.u32 2147483648, %v336_v2  ;;  %v401_v19 = vand.u32 2147483647, %v336_v2  ;;  %vm397_vm12 = vweird.f32 %v336_v2 }
 0x52c   :  { %v954_v4 = vpop.eup %953 }
 0x52d   :  { %v956_v5 = vpop.eup %955  ;;  %912 = vmatmul.msk.f32.vlgmr.msra.gmra.mxu1 %vm114_vm1, %v954_v4  ;;  %v735_v7 = vsel %vm114_vm1, %v954_v4, 0.0  ;;  %v404_v22 = vor.u32 1.1754944e-38, %v403_v15  ;;  %vm402_vm15 = vcmp.eq.f32.partialorder %v401_v19, 8.507059e+37 }
 0x52e   :  { %736 = vadd.xlane.f32.xlu1 %v735_v7  ;;  %v738_v9 = vsel %vm114_vm1, %v956_v5, 0.0 }
 0x52f   :  { %739 = vadd.xlane.f32.xlu2 %v738_v9 }
 0x531   :  { %v958_v10 = vpop.eup %957 }
 0x532   :  { %v393_v12 = vmul.f32 %v958_v10, %v336_v2  ;;  %v550_v13 = vpop.xlane.xlu2 %549  ;;  %vm398_vm11 = vweird.f32 %v958_v10 }
 0x533   :  { %959 = vrcp.f32 %v550_v13  ;;  %vm399_vm14 = vmor %vm397_vm12, %vm398_vm11  ;;  %v617_v42 = vand.u32 2147483648, %v550_v13  ;;  %vm611_vm6 = vweird.f32 %v550_v13  ;;  %v615_v43 = vand.u32 2147483647, %v550_v13 }
 0x534   :  { %v394_v14 = vsub.f32 1.0, %v393_v12 }
 0x535   :  { %v618_v49 = vor.u32 1.1754944e-38, %v617_v42  ;;  %vm616_vm8 = vcmp.eq.f32.partialorder %v615_v43, 8.507059e+37 }
 0x536   :  { %v395_v18 = vmul.f32 %v958_v10, %v394_v14 }
 0x538   :  { %v396_v20 = vadd.f32 %v958_v10, %v395_v18 }
 0x539   :  { %v960_v21 = vpop.eup %959  ;;  %v768_v23 = vpop.permute.xlu1 %767 }
 0x53a   :  { %v400_v25 = vsel %vm399_vm14, %v958_v10, %v396_v20  ;;  %v607_v26 = vmul.f32 %v960_v21, %v550_v13  ;;  %v553_v27 = vpop.xlane.xlu2 %552  ;;  %788 = vmatpush.msrb.mxu0 %v768_v23  ;;  %vm612_vm5 = vweird.f32 %v960_v21 }
 0x53b   :  { %v405_v30 = vsel %vm402_vm15, %v404_v22, %v400_v25  ;;  %961 = vrcp.f32 %v553_v27  ;;  %913 = vmatmul.msk.f32.vlgmr.msrb.gmra.mxu0 %vm114_vm1, %v956_v5  ;;  %vm613_vm7 = vmor %vm611_vm6, %vm612_vm5  ;;  %v631_v52 = vand.u32 2147483648, %v553_v27  ;;  %vm625_vm10 = vweird.f32 %v553_v27 }
 0x53c   :  { %v608_v33 = vsub.f32 1.0, %v607_v26  ;;  %v420_v34 = vmul.f32 %v405_v30, %v1207_v28  ;;  %v629_v54 = vand.u32 2147483647, %v553_v27 }
 0x53d   :  { %v632_v32 = vor.u32 1.1754944e-38, %v631_v52 }
 0x53e   :  { %v609_v35 = vmul.f32 %v960_v21, %v608_v33  ;;  %896 = vmatmul.msk.f32.vlgmr.msra.gmra.mxu2 %vm114_vm1, %v420_v34  ;;  %vm630_vm12 = vcmp.eq.f32.partialorder %v629_v54, 8.507059e+37 }
 0x540   :  { %v610_v40 = vadd.f32 %v960_v21, %v609_v35 }
 0x541   :  { %v962_v38 = vpop.eup %961 }
 0x542   :  { %v621_v41 = vmul.f32 %v962_v38, %v553_v27  ;;  %v614_v28 = vsel %vm613_vm7, %v960_v21, %v610_v40  ;;  %vm626_vm9 = vweird.f32 %v962_v38  ;;  %v934_v27 = vld [vmem:[%s1270_s3] ss:$0 sm:$0xff] }
 0x543   :  { %v619_v50 = vsel %vm616_vm8, %v618_v49, %v614_v28  ;;  %vm627_vm11 = vmor %vm625_vm10, %vm626_vm9 }
 0x544   :  { %v622_v44 = vsub.f32 1.0, %v621_v41  ;;  %v634_v53 = vmul.f32 %v619_v50, %v1228_v48 }
 0x546   :  { %v623_v45 = vmul.f32 %v962_v38, %v622_v44  ;;  %897 = vmatmul.msk.f32.gmra.mxu2 %vm114_vm1, %v421_v6 }
 0x548   :  { %v624_v51 = vadd.f32 %v962_v38, %v623_v45 }
 0x54a   :  { %v628_v55 = vsel %vm627_vm11, %v962_v38, %v624_v51 }
 0x54b   :  { %v633_v56 = vsel %vm630_vm12, %v632_v32, %v628_v55 }
 0x54c   :  { %v635_v16 = vmul.f32 %v633_v56, %v603_v57 }
 0x54e   :  { %906 = vmatmul.msk.f32.vlgmr.msrb.gmra.mxu2 %vm114_vm1, %v634_v53 }
 0x556   :  { %907 = vmatmul.msk.f32.gmra.mxu2 %vm114_vm1, %v635_v16 }
 0x5a1   :  { %v737_v59 = vpop.xlane.xlu1 %736 }
 0x5a2   :  { %963 = vrcp.f32 %v737_v59  ;;  %v740_v60 = vpop.xlane.xlu2 %739  ;;  %v804_v1 = vand.u32 2147483648, %v737_v59  ;;  %v802_v4 = vand.u32 2147483647, %v737_v59  ;;  %vm798_vm14 = vweird.f32 %v737_v59 }
 0x5a3   :  { %965 = vrcp.f32 %v740_v60  ;;  %v818_v14 = vand.u32 2147483648, %v740_v60  ;;  %vm812_vm4 = vweird.f32 %v740_v60  ;;  %v816_v15 = vand.u32 2147483647, %v740_v60 }
 0x5a4   :  { %v805_v8 = vor.u32 1.1754944e-38, %v804_v1  ;;  %vm803_vm2 = vcmp.eq.f32.partialorder %v802_v4, 8.507059e+37 }
 0x5a5   :  { %v819_v19 = vor.u32 1.1754944e-38, %v818_v14  ;;  %vm817_vm6 = vcmp.eq.f32.partialorder %v816_v15, 8.507059e+37 }
 0x5a8   :  { %v964_v61 = vpop.eup %963 }
 0x5a9   :  { %v966_v48 = vpop.eup %965  ;;  %v794_v62 = vmul.f32 %v964_v61, %v737_v59  ;;  %vm799_vm13 = vweird.f32 %v964_v61 }
 0x5aa   :  { %v808_v63 = vmul.f32 %v966_v48, %v740_v60  ;;  %vm800_vm15 = vmor %vm798_vm14, %vm799_vm13  ;;  %v764_v10 = vpop.f32.mrf.mxu1  ;;  %vm813_vm3 = vweird.f32 %v966_v48 }
 0x5ab   :  { %v795_v0 = vsub.f32 1.0, %v794_v62  ;;  %vm814_vm5 = vmor %vm812_vm4, %vm813_vm3 }
 0x5ac   :  { %v809_v2 = vsub.f32 1.0, %v808_v63 }
 0x5ad   :  { %v796_v3 = vmul.f32 %v964_v61, %v795_v0 }
 0x5ae   :  { %v810_v5 = vmul.f32 %v966_v48, %v809_v2 }
 0x5af   :  { %v797_v7 = vadd.f32 %v964_v61, %v796_v3 }
 0x5b0   :  { %v811_v13 = vadd.f32 %v966_v48, %v810_v5 }
 0x5b1   :  { %v801_v9 = vsel %vm800_vm15, %v964_v61, %v797_v7 }
 0x5b2   :  { %v806_v11 = vsel %vm803_vm2, %v805_v8, %v801_v9  ;;  %v815_v17 = vsel %vm814_vm5, %v966_v48, %v811_v13 }
 0x5b3   :  { %v821_v12 = vmul.f32 %v806_v11, %v764_v10  ;;  %v820_v20 = vsel %vm817_vm6, %v819_v19, %v815_v17 }
 0x5b5   :  { %914 = vmatmul.msk.f32.vlgmr.msrb.gmra.mxu3 %vm114_vm1, %v821_v12 }
 0x5b8   :  { %v790_v18 = vpop.f32.mrf.mxu0 }
 0x5b9   :  { %v822_v21 = vmul.f32 %v820_v20, %v790_v18 }
 0x5bd   :  { %915 = vmatmul.msk.f32.gmra.mxu3 %vm114_vm1, %v822_v21 }
 0x5c1   :  { %v445_v22 = vpop.f32.mrf.mxu2 }
 0x5c2   :  { %v475_v25 = vadd.f32 %v1224_v46, %v445_v22 }
 0x5c9   :  { %v448_v23 = vpop.f32.mrf.mxu2 }
 0x5ca   :  { %v478_v34 = vadd.f32 %v1226_v47, %v448_v23 }
 0x5d1   :  { %v659_v24 = vpop.f32.mrf.mxu2 }
 0x5d2   :  { %v665_v26 = vadd.f32 %v659_v24, %v475_v25 }
 0x5d9   :  { %v662_v33 = vpop.f32.mrf.mxu2 }
 0x5da   :  { %v666_v35 = vadd.f32 %v662_v33, %v478_v34 }
 0x638   :  { %v846_v29 = vpop.f32.mrf.mxu3 }
 0x639   :  { %v852_v30 = vadd.f32 %v846_v29, %v665_v26 }
 0x63b   :  { %v858_v31 = vadd.f32 %v934_v27, %v852_v30 }
 0x63d   :  { %860 = vst.msk [vmem:[#allocation8] sm:$0xff] %vm71_vm0, %v858_v31 }
 0x640   :  { %v849_v36 = vpop.f32.mrf.mxu3 }
 0x641   :  { %v853_v46 = vadd.f32 %v849_v36, %v666_v35 }
 0x643   :  { %v859_v37 = vadd.f32 %v934_v27, %v853_v46 }
 0x645   :  { %861 = vst.msk [vmem:[#allocation8 + $0x8] sm:$0xff] %vm71_vm0, %v859_v37 }
 0x646   :  { %874 = dma.vmem_to_hbm [thread:$0]  %s867_s17, 256, %s869_s20, [#allocation4], %s1070_s23, %s1070_s23, %s1071_s24  }
 0x647   :  { %1067 = dma.done.wait [#allocation4], 256  }
 0x648   :  { %1068 = vsyncadd [#allocation4], 4294967040 }
 0x649   :  { %879 = vsyncpa [#allocation3], 1 }
 0x64a   :  { %880 = vsyncpa [#allocation6], 1 }
 0x64b   :  { %881 = vsyncpa [#allocation4], 1 }

</bundles_post_ra>
